<compile_context>
chip_gen: v7x
topology: tpu7x:2x2x1
jax: 0.10.0
libtpu: 0.0.40
codegen_flags: <defaults>
</compile_context>

<pallas_src>
import jax
import jax.numpy as jnp
from jax.experimental import pallas as pl
from jax.experimental.pallas import tpu as pltpu

LANE = 128          # TPU lane width
SUBLANE = 8
MAX_TILE_B = 512    # ~85% of HBM roofline at 512-row tiles (measured sweep)


def _round_up(n, m):
    return pl.cdiv(n, m) * m


def _pad2d(a, rows, cols):
    r, c = a.shape
    if r == rows and c == cols:
        return a
    return jnp.pad(a, ((0, rows - r), (0, cols - c)))


def autoencoder_kernel(x_ref,
                       w1_ref, b1_ref,   # encoder layer 1: input -> hidden
                       w2_ref, b2_ref,   # encoder layer 2: hidden -> latent
                       w3_ref, b3_ref,   # decoder layer 1: latent -> hidden
                       w4_ref, b4_ref,   # decoder layer 2: hidden -> input
                       enc_ref, dec_ref):
    # x may arrive as f32 (no host-side pad/cast pass was needed) or as padded
    # bf16; the VPU cast here is free under the DMA/MXU bound.
    x = x_ref[...].astype(jnp.bfloat16)                          # [TILE_B, in_p]

    # ----- encoder -----
    h1 = jnp.dot(x, w1_ref[...], preferred_element_type=jnp.float32) + b1_ref[...]
    h1 = jnp.maximum(h1, 0.0).astype(jnp.bfloat16)               # ReLU (VPU)
    enc = jnp.dot(h1, w2_ref[...], preferred_element_type=jnp.float32) + b2_ref[...]

    # ----- decoder -----
    h2 = jnp.dot(enc.astype(jnp.bfloat16), w3_ref[...],
                 preferred_element_type=jnp.float32) + b3_ref[...]
    h2 = jnp.maximum(h2, 0.0).astype(jnp.bfloat16)               # ReLU (VPU)
    dec = jnp.dot(h2, w4_ref[...], preferred_element_type=jnp.float32) + b4_ref[...]

    enc_ref[...] = enc.astype(enc_ref.dtype)                     # lane-dense store
    dec_ref[...] = dec.astype(dec_ref.dtype)                     # lane-dense store


def _choose_tile_b(B):
    """Largest batch tile <= MAX_TILE_B that still yields >= 2 grid steps
    (so the 'parallel' axis shards over v7x's two TensorCores); small batches
    get a single full-size step. Always sublane-aligned."""
    b_ceil = _round_up(B, SUBLANE)
    if b_ceil >= 2 * LANE:
        return min(MAX_TILE_B, _round_up(b_ceil // 2, LANE))
    return b_ceil


def autoencoder_forward(x, params, *, tile_b=None, out_dtype=jnp.bfloat16):
    """x: [B, input_dim] float32. params: dict of (w1,b1,...,w4,b4) with weights
    stored [in, out] (already transposed vs. PyTorch); biases (1,out) or (out,).
    Returns (encoded, decoded) in `out_dtype`."""
    B, input_dim = x.shape
    hidden_dim = params["w1"].shape[1]
    latent_dim = params["w2"].shape[1]

    in_p = _round_up(input_dim, LANE)
    hid_p = _round_up(hidden_dim, LANE)
    lat_p = _round_up(latent_dim, LANE)

    if tile_b is None:
        tile_b = _choose_tile_b(B)
    b_p = _round_up(B, tile_b)

    def as_row(b):  # accept PyTorch-shaped (out,) biases
        return b.reshape(1, -1) if b.ndim == 1 else b

    # Zero-pad weights/biases (numerically exact) and cast matmul operands to bf16.
    w1 = _pad2d(params["w1"], in_p, hid_p).astype(jnp.bfloat16)
    w2 = _pad2d(params["w2"], hid_p, lat_p).astype(jnp.bfloat16)
    w3 = _pad2d(params["w3"], lat_p, hid_p).astype(jnp.bfloat16)
    w4 = _pad2d(params["w4"], hid_p, in_p).astype(jnp.bfloat16)
    b1 = _pad2d(as_row(params["b1"]), 1, hid_p).astype(jnp.float32)
    b2 = _pad2d(as_row(params["b2"]), 1, lat_p).astype(jnp.float32)
    b3 = _pad2d(as_row(params["b3"]), 1, hid_p).astype(jnp.float32)
    b4 = _pad2d(as_row(params["b4"]), 1, in_p).astype(jnp.float32)

    # Skip the host-side pad+cast HBM pass on x when nothing needs padding;
    # the kernel casts f32->bf16 on the VPU instead.
    if b_p == B and in_p == input_dim:
        x_in = x
    else:
        x_in = _pad2d(x, b_p, in_p).astype(jnp.bfloat16)

    grid = (b_p // tile_b,)

    tiled = lambda shape: pl.BlockSpec(shape, lambda i: (i, 0))     # moves with batch
    resident = lambda shape: pl.BlockSpec(shape, lambda i: (0, 0),  # VMEM-resident,
                                          pipeline_mode=pl.Buffered(1))  # single buffer

    in_specs = [
        tiled((tile_b, in_p)),
        resident((in_p, hid_p)), resident((1, hid_p)),
        resident((hid_p, lat_p)), resident((1, lat_p)),
        resident((lat_p, hid_p)), resident((1, hid_p)),
        resident((hid_p, in_p)), resident((1, in_p)),
    ]
    out_specs = (tiled((tile_b, lat_p)), tiled((tile_b, in_p)))
    out_shape = (jax.ShapeDtypeStruct((b_p, lat_p), out_dtype),
                 jax.ShapeDtypeStruct((b_p, in_p), out_dtype))

    # Honest VMEM accounting:
    #   resident weights (bf16, single-buffered) + biases (f32, single-buffered)
    #   + double-buffered streamed x / enc / dec tiles
    #   + in-kernel intermediates (f32 h1,h2,enc,dec and bf16 copies of h1,h2,enc)
    x_bytes = x_in.dtype.itemsize
    out_bytes = jnp.dtype(out_dtype).itemsize
    resident_bytes = (2 * (in_p * hid_p + hid_p * lat_p + lat_p * hid_p + hid_p * in_p)
                      + 4 * (2 * hid_p + lat_p + in_p))
    stream_bytes = 2 * (x_bytes * tile_b * in_p
                        + out_bytes * tile_b * (lat_p + in_p))
    interm_bytes = (4 * tile_b * (2 * hid_p + lat_p + in_p)
                    + 2 * tile_b * (2 * hid_p + lat_p))
    need = resident_bytes + stream_bytes + interm_bytes
    vmem_bytes = int(min(max(need * 5 // 4 + (2 << 20), 16 << 20), 64 << 20))

    enc_p, dec_p = pl.pallas_call(
        autoencoder_kernel,
        grid=grid,
        in_specs=in_specs,
        out_specs=out_specs,
        out_shape=out_shape,
        compiler_params=pltpu.CompilerParams(
            dimension_semantics=("parallel",),
            vmem_limit_bytes=vmem_bytes,
        ),
    )(x_in, w1, b1, w2, b2, w3, b3, w4, b4)

    # Slice off padding only when padding was actually added.
    if b_p != B or lat_p != latent_dim:
        enc_p = enc_p[:B, :latent_dim]
    if b_p != B or in_p != input_dim:
        dec_p = dec_p[:B, :input_dim]
    return enc_p, dec_p


def init_params(key, input_dim, hidden_dim, latent_dim):
    """nn.Linear-style uniform(-1/sqrt(fan_in), 1/sqrt(fan_in)) init.
    Weights stored [in, out] (transposed vs. PyTorch)."""
    def linear(k, fan_in, fan_out):
        kw, kb = jax.random.split(k)
        bound = 1.0 / jnp.sqrt(fan_in)
        w = jax.random.uniform(kw, (fan_in, fan_out), jnp.float32, -bound, bound)
        b = jax.random.uniform(kb, (1, fan_out), jnp.float32, -bound, bound)
        return w, b

    k1, k2, k3, k4 = jax.random.split(key, 4)
    w1, b1 = linear(k1, input_dim, hidden_dim)
    w2, b2 = linear(k2, hidden_dim, latent_dim)
    w3, b3 = linear(k3, latent_dim, hidden_dim)
    w4, b4 = linear(k4, hidden_dim, input_dim)
    return dict(w1=w1, b1=b1, w2=w2, b2=b2, w3=w3, b3=b3, w4=w4, b4=b4)


def autoencoder_ref_f32(x, p):
    """Pure-f32 reference (exact PyTorch-module semantics)."""
    h1 = jnp.maximum(x @ p["w1"] + p["b1"], 0.0)
    enc = h1 @ p["w2"] + p["b2"]
    h2 = jnp.maximum(enc @ p["w3"] + p["b3"], 0.0)
    dec = h2 @ p["w4"] + p["b4"]
    return enc, dec


def autoencoder_ref_bf16(x, p):
    """Reference with the same bf16-operand / f32-accumulate numerics as the kernel."""
    bf = jnp.bfloat16
    dot = lambda a, b: jnp.dot(a.astype(bf), b.astype(bf),
                               preferred_element_type=jnp.float32)
    h1 = jnp.maximum(dot(x, p["w1"]) + p["b1"], 0.0)
    enc = dot(h1, p["w2"]) + p["b2"]
    h2 = jnp.maximum(dot(enc, p["w3"]) + p["b3"], 0.0)
    dec = dot(h2, p["w4"]) + p["b4"]
    return enc, dec


if __name__ == "__main__":
    B, INPUT_DIM, HIDDEN_DIM, LATENT_DIM = 256, 128, 64, 32

    key = jax.random.PRNGKey(0)
    kx, kp = jax.random.split(key)
    x = jax.random.normal(kx, (B, INPUT_DIM), jnp.float32)
    params = init_params(kp, INPUT_DIM, HIDDEN_DIM, LATENT_DIM)

    # Default (perf) path: bf16 outputs, no host-side x pad/cast, >=2 grid steps.
    enc, dec = autoencoder_forward(x, params)
    jax.block_until_ready((enc, dec))
    assert enc.shape == (B, LATENT_DIM) and dec.shape == (B, INPUT_DIM)
    assert enc.dtype == jnp.bfloat16 and dec.dtype == jnp.bfloat16

    enc_b, dec_b = autoencoder_ref_bf16(x, params)
    assert jnp.allclose(enc.astype(jnp.float32), enc_b, atol=2e-2, rtol=2e-2)
    assert jnp.allclose(dec.astype(jnp.float32), dec_b, atol=2e-2, rtol=2e-2)

    # f32-output path (matches the PyTorch module's output dtype exactly).
    enc32, dec32 = autoencoder_forward(x, params, out_dtype=jnp.float32)
    jax.block_until_ready((enc32, dec32))
    assert jnp.allclose(enc32, enc_b, atol=2e-3, rtol=2e-3)
    assert jnp.allclose(dec32, dec_b, atol=2e-3, rtol=2e-3)

    # Loose sanity check vs. the full-f32 PyTorch-equivalent forward.
    enc_f, dec_f = autoencoder_ref_f32(x, params)
    assert jnp.allclose(enc32, enc_f, atol=5e-2, rtol=5e-2)
    assert jnp.allclose(dec32, dec_f, atol=5e-2, rtol=5e-2)

    print("KERNEL_OK")
</pallas_src>

<mosaic_0001>
module attributes {stable_mosaic.version = 11 : i64} {
  func.func @autoencoder_kernel(%arg0: i32, %arg1: memref<128x128xf32, #tpu.memory_space<vmem>>, %arg2: memref<128x128xbf16, #tpu.memory_space<vmem>>, %arg3: memref<1x128xf32, #tpu.memory_space<vmem>>, %arg4: memref<128x128xbf16, #tpu.memory_space<vmem>>, %arg5: memref<1x128xf32, #tpu.memory_space<vmem>>, %arg6: memref<128x128xbf16, #tpu.memory_space<vmem>>, %arg7: memref<1x128xf32, #tpu.memory_space<vmem>>, %arg8: memref<128x128xbf16, #tpu.memory_space<vmem>>, %arg9: memref<1x128xf32, #tpu.memory_space<vmem>>, %arg10: memref<128x128xbf16, #tpu.memory_space<vmem>>, %arg11: memref<128x128xbf16, #tpu.memory_space<vmem>>) attributes {dimension_semantics = [#tpu.dimension_semantics<parallel>], iteration_bounds = array<i64: 2>, scalar_prefetch = 0 : i64, scratch_operands = 0 : i64, tpu.core_type = #tpu.core_type<tc>, window_params = [{transform_indices = @transform_0, window_bounds = array<i64: 128, 128>}, {pipeline_mode = #tpu.pipeline_mode<synchronous>, transform_indices = @transform_1, window_bounds = array<i64: 128, 128>}, {pipeline_mode = #tpu.pipeline_mode<synchronous>, transform_indices = @transform_2, window_bounds = array<i64: 1, 128>}, {pipeline_mode = #tpu.pipeline_mode<synchronous>, transform_indices = @transform_3, window_bounds = array<i64: 128, 128>}, {pipeline_mode = #tpu.pipeline_mode<synchronous>, transform_indices = @transform_4, window_bounds = array<i64: 1, 128>}, {pipeline_mode = #tpu.pipeline_mode<synchronous>, transform_indices = @transform_5, window_bounds = array<i64: 128, 128>}, {pipeline_mode = #tpu.pipeline_mode<synchronous>, transform_indices = @transform_6, window_bounds = array<i64: 1, 128>}, {pipeline_mode = #tpu.pipeline_mode<synchronous>, transform_indices = @transform_7, window_bounds = array<i64: 128, 128>}, {pipeline_mode = #tpu.pipeline_mode<synchronous>, transform_indices = @transform_8, window_bounds = array<i64: 1, 128>}, {transform_indices = @transform_9, window_bounds = array<i64: 128, 128>}, {transform_indices = @transform_10, window_bounds = array<i64: 128, 128>}]} {
    %c0 = arith.constant 0 : index
    %c0_0 = arith.constant 0 : index
    %0 = vector.load %arg1[%c0, %c0_0] : memref<128x128xf32, #tpu.memory_space<vmem>>, vector<128x128xf32>
    %1 = arith.truncf %0 : vector<128x128xf32> to vector<128x128xbf16>
    %c0_1 = arith.constant 0 : index
    %c0_2 = arith.constant 0 : index
    %2 = vector.load %arg2[%c0_1, %c0_2] : memref<128x128xbf16, #tpu.memory_space<vmem>>, vector<128x128xbf16>
    %cst = arith.constant dense<0.000000e+00> : vector<128x128xf32>
    %3 = tpu.matmul %1, %2, %cst {dimension_numbers = #tpu.dot_dimension_numbers<[1], [0], [0], [1], [0, 0, 1, 1], [], []>} : vector<128x128xbf16>, vector<128x128xbf16>, vector<128x128xf32> -> vector<128x128xf32>
    %c0_3 = arith.constant 0 : index
    %c0_4 = arith.constant 0 : index
    %4 = vector.load %arg3[%c0_3, %c0_4] : memref<1x128xf32, #tpu.memory_space<vmem>>, vector<1x128xf32>
    %5 = vector.broadcast %4 : vector<1x128xf32> to vector<128x128xf32>
    %6 = arith.addf %3, %5 : vector<128x128xf32>
    %cst_5 = arith.constant 0.000000e+00 : f32
    %7 = vector.broadcast %cst_5 : f32 to vector<128x128xf32>
    %8 = arith.maximumf %6, %7 : vector<128x128xf32>
    %9 = arith.truncf %8 : vector<128x128xf32> to vector<128x128xbf16>
    %c0_6 = arith.constant 0 : index
    %c0_7 = arith.constant 0 : index
    %10 = vector.load %arg4[%c0_6, %c0_7] : memref<128x128xbf16, #tpu.memory_space<vmem>>, vector<128x128xbf16>
    %cst_8 = arith.constant dense<0.000000e+00> : vector<128x128xf32>
    %11 = tpu.matmul %9, %10, %cst_8 {dimension_numbers = #tpu.dot_dimension_numbers<[1], [0], [0], [1], [0, 0, 1, 1], [], []>} : vector<128x128xbf16>, vector<128x128xbf16>, vector<128x128xf32> -> vector<128x128xf32>
    %c0_9 = arith.constant 0 : index
    %c0_10 = arith.constant 0 : index
    %12 = vector.load %arg5[%c0_9, %c0_10] : memref<1x128xf32, #tpu.memory_space<vmem>>, vector<1x128xf32>
    %13 = vector.broadcast %12 : vector<1x128xf32> to vector<128x128xf32>
    %14 = arith.addf %11, %13 : vector<128x128xf32>
    %15 = arith.truncf %14 : vector<128x128xf32> to vector<128x128xbf16>
    %c0_11 = arith.constant 0 : index
    %c0_12 = arith.constant 0 : index
    %16 = vector.load %arg6[%c0_11, %c0_12] : memref<128x128xbf16, #tpu.memory_space<vmem>>, vector<128x128xbf16>
    %cst_13 = arith.constant dense<0.000000e+00> : vector<128x128xf32>
    %17 = tpu.matmul %15, %16, %cst_13 {dimension_numbers = #tpu.dot_dimension_numbers<[1], [0], [0], [1], [0, 0, 1, 1], [], []>} : vector<128x128xbf16>, vector<128x128xbf16>, vector<128x128xf32> -> vector<128x128xf32>
    %c0_14 = arith.constant 0 : index
    %c0_15 = arith.constant 0 : index
    %18 = vector.load %arg7[%c0_14, %c0_15] : memref<1x128xf32, #tpu.memory_space<vmem>>, vector<1x128xf32>
    %19 = vector.broadcast %18 : vector<1x128xf32> to vector<128x128xf32>
    %20 = arith.addf %17, %19 : vector<128x128xf32>
    %cst_16 = arith.constant 0.000000e+00 : f32
    %21 = vector.broadcast %cst_16 : f32 to vector<128x128xf32>
    %22 = arith.maximumf %20, %21 : vector<128x128xf32>
    %23 = arith.truncf %22 : vector<128x128xf32> to vector<128x128xbf16>
    %c0_17 = arith.constant 0 : index
    %c0_18 = arith.constant 0 : index
    %24 = vector.load %arg8[%c0_17, %c0_18] : memref<128x128xbf16, #tpu.memory_space<vmem>>, vector<128x128xbf16>
    %cst_19 = arith.constant dense<0.000000e+00> : vector<128x128xf32>
    %25 = tpu.matmul %23, %24, %cst_19 {dimension_numbers = #tpu.dot_dimension_numbers<[1], [0], [0], [1], [0, 0, 1, 1], [], []>} : vector<128x128xbf16>, vector<128x128xbf16>, vector<128x128xf32> -> vector<128x128xf32>
    %c0_20 = arith.constant 0 : index
    %c0_21 = arith.constant 0 : index
    %26 = vector.load %arg9[%c0_20, %c0_21] : memref<1x128xf32, #tpu.memory_space<vmem>>, vector<1x128xf32>
    %27 = vector.broadcast %26 : vector<1x128xf32> to vector<128x128xf32>
    %28 = arith.addf %25, %27 : vector<128x128xf32>
    %29 = arith.truncf %14 : vector<128x128xf32> to vector<128x128xbf16>
    %c0_22 = arith.constant 0 : index
    %c0_23 = arith.constant 0 : index
    %30 = vector.load %arg10[%c0_22, %c0_23] : memref<128x128xbf16, #tpu.memory_space<vmem>>, vector<128x128xbf16>
    tpu.vector_store %arg10[%c0_22, %c0_23], %29 {strides = array<i32>} : memref<128x128xbf16, #tpu.memory_space<vmem>>, vector<128x128xbf16>,
    %31 = arith.truncf %28 : vector<128x128xf32> to vector<128x128xbf16>
    %c0_24 = arith.constant 0 : index
    %c0_25 = arith.constant 0 : index
    %32 = vector.load %arg11[%c0_24, %c0_25] : memref<128x128xbf16, #tpu.memory_space<vmem>>, vector<128x128xbf16>
    tpu.vector_store %arg11[%c0_24, %c0_25], %31 {strides = array<i32>} : memref<128x128xbf16, #tpu.memory_space<vmem>>, vector<128x128xbf16>,
    return
  }
  func.func @transform_0(%arg0: i32) -> (i32, i32) {
    %c0_i32 = arith.constant 0 : i32
    %c0_i32_0 = arith.constant 0 : i32
    return %arg0, %c0_i32 : i32, i32
  }
  func.func @transform_1(%arg0: i32) -> (i32, i32) {
    %c0_i32 = arith.constant 0 : i32
    %c0_i32_0 = arith.constant 0 : i32
    %c0_i32_1 = arith.constant 0 : i32
    return %c0_i32, %c0_i32_0 : i32, i32
  }
  func.func @transform_2(%arg0: i32) -> (i32, i32) {
    %c0_i32 = arith.constant 0 : i32
    %c0_i32_0 = arith.constant 0 : i32
    %c0_i32_1 = arith.constant 0 : i32
    return %c0_i32, %c0_i32_0 : i32, i32
  }
  func.func @transform_3(%arg0: i32) -> (i32, i32) {
    %c0_i32 = arith.constant 0 : i32
    %c0_i32_0 = arith.constant 0 : i32
    %c0_i32_1 = arith.constant 0 : i32
    return %c0_i32, %c0_i32_0 : i32, i32
  }
  func.func @transform_4(%arg0: i32) -> (i32, i32) {
    %c0_i32 = arith.constant 0 : i32
    %c0_i32_0 = arith.constant 0 : i32
    %c0_i32_1 = arith.constant 0 : i32
    return %c0_i32, %c0_i32_0 : i32, i32
  }
  func.func @transform_5(%arg0: i32) -> (i32, i32) {
    %c0_i32 = arith.constant 0 : i32
    %c0_i32_0 = arith.constant 0 : i32
    %c0_i32_1 = arith.constant 0 : i32
    return %c0_i32, %c0_i32_0 : i32, i32
  }
  func.func @transform_6(%arg0: i32) -> (i32, i32) {
    %c0_i32 = arith.constant 0 : i32
    %c0_i32_0 = arith.constant 0 : i32
    %c0_i32_1 = arith.constant 0 : i32
    return %c0_i32, %c0_i32_0 : i32, i32
  }
  func.func @transform_7(%arg0: i32) -> (i32, i32) {
    %c0_i32 = arith.constant 0 : i32
    %c0_i32_0 = arith.constant 0 : i32
    %c0_i32_1 = arith.constant 0 : i32
    return %c0_i32, %c0_i32_0 : i32, i32
  }
  func.func @transform_8(%arg0: i32) -> (i32, i32) {
    %c0_i32 = arith.constant 0 : i32
    %c0_i32_0 = arith.constant 0 : i32
    %c0_i32_1 = arith.constant 0 : i32
    return %c0_i32, %c0_i32_0 : i32, i32
  }
  func.func @transform_9(%arg0: i32) -> (i32, i32) {
    %c0_i32 = arith.constant 0 : i32
    %c0_i32_0 = arith.constant 0 : i32
    return %arg0, %c0_i32 : i32, i32
  }
  func.func @transform_10(%arg0: i32) -> (i32, i32) {
    %c0_i32 = arith.constant 0 : i32
    %c0_i32_0 = arith.constant 0 : i32
    return %arg0, %c0_i32 : i32, i32
  }
}

</mosaic_0001>

<bundles_post_ra>
// kernel: tpu_custom_call.1
= control target key start
LH: loop header
LB: loop body
LE: loop exit
PB: predicated region body
PF: predicated region fallthrough
CT: control target
= control target key end

     0   :  { %s2783_s0 = inlined_call_operand.hbm [shape: f32[256,128], index: 0, kind: input, shape index: {}]   ;;  %s2784_s1 = inlined_call_operand.hbm [shape: bf16[128,128], index: 1, kind: input, shape index: {}]   ;;  %s2785_s2 = inlined_call_operand.vmem [shape: f32[1,128], index: 2, kind: input, shape index: {}]   ;;  %s2786_s3 = inlined_call_operand.hbm [shape: bf16[128,128], index: 3, kind: input, shape index: {}]   ;;  %s2787_s4 = inlined_call_operand.vmem [shape: f32[1,128], index: 4, kind: input, shape index: {}]   ;;  %s2788_s5 = inlined_call_operand.hbm [shape: bf16[128,128], index: 5, kind: input, shape index: {}]   ;;  %s2789_s6 = inlined_call_operand.vmem [shape: f32[1,128], index: 6, kind: input, shape index: {}]   ;;  %s2790_s7 = inlined_call_operand.hbm [shape: bf16[128,128], index: 7, kind: input, shape index: {}]   ;;  %s2791_s8 = inlined_call_operand.vmem [shape: f32[1,128], index: 8, kind: input, shape index: {}]   ;;  %s2792_s9 = inlined_call_operand.hbm [shape: bf16[256,128], index: 9, kind: output, shape index: {0}]   ;;  %s2793_s10 = inlined_call_operand.hbm [shape: bf16[256,128], index: 10, kind: output, shape index: {1}]  }
   0x1   :  { %2800 = sst [smem:[#allocation21_spill]] %s2791_s8 }
   0x2   :  { %2801 = sst [smem:[#allocation22_spill]] %s2793_s10 }
   0x3   :  { %16 = vsyncpa [#allocation3], 0 }
   0x4   :  { %18 = vsyncpa [#allocation3 + $0x1], 0 }
   0x5   :  { %19 = vsyncpa [#allocation6], 0 }
   0x6   :  { %20 = vsyncpa [#allocation9], 0 }
   0x7   :  { %21 = vsyncpa [#allocation4], 0 }
   0x8   :  { %23 = vsyncpa [#allocation4 + $0x1], 0 }
   0x9   :  { %24 = vsyncpa [#allocation13], 0 }
   0xa   :  { %26 = vsyncpa [#allocation13 + $0x1], 0  ;;  %s2396_s13 = smov 0   ;;  %s2398_s14 = smov 0  }
   0xb   :  { %s2400_s15 = smov 0   ;;  %s2402_s16 = smov 0  }
   0xc LB: > { %2802 = sst [smem:[#allocation19_spill]] %s2314_s13  ;;  %s2417_s17 = sadd.s32 4294967295, %s2326_s16   ;;  %s2326_s16 = sphi %s2402_s16, %s2827_s16   ;;  %s2322_s15 = sphi %s2400_s15, %s2826_s15   ;;  %s2318_s14 = sphi %s2398_s14, %s2825_s14   ;;  %s2314_s13 = sphi %s2396_s13, %s2824_s13  }
   0xd   : > { %s1533_s18 = sadd.s32 4294967294, %s2326_s16   ;;  %p52_p0 = scmp.ne.s32.totalorder %s2318_s14, %s2314_s13 }
   0xe   : > { %p2794_p1 = scmp.eq.s32.totalorder %s2417_s17, 0  ;;  %p250_p3 = scmp.eq.s32.totalorder %s1533_s18, 1 }
   0xf   : > { %p1534_p5 = scmp.ge.s32.totalorder %s2326_s16, 1  ;;  %p283_p7 = scmp.lt.s32.totalorder %s2326_s16, 3 }
  0x10   : > { %p2426_p4 = por %p2794_p1, %p52_p0  ;;  %p2431_p6 = por %p250_p3, %p52_p0 }
  0x11   : > { %p2436_p8 = pnand %p1534_p5, %p283_p7  ;;  %s2328_s22 = smov [#allocation5]  }
  0x12   : > { %s2803_s19 = scalar_select %p2426_p4, 1, 0 }
  0x13   : > { %s2804_s20 = scalar_select %p2431_p6, 1, 0 }
  0x14   : > { %s2806_s21 = scalar_select %p2436_p8, 1, 0 }
  0x15   : > { %2805 = sst [smem:[#allocation20_spill]] %s2804_s20  ;;  %s295_s23 = sshll.u32 %s2328_s22, 4  ;;  %s2440_s23 = int_to_ptr.vmem [resolvable:$true] %s295_s23 }
  0x16   : > { %p1970_p9 = pneg %p2436_p8  ;;  %s2329_s25 = smov [#allocation8]  }
  0x17   : > { %s327_s26 = sshll.u32 %s2329_s25, 4  ;;  %s2330_s27 = smov [#allocation7]   ;;  %s2451_s26 = int_to_ptr.vmem [resolvable:$true] %s327_s26 }
  0x18   : > { %p2447_p11 = pnand %p1970_p9, %p2794_p1  ;;  %s2453_s28 = sshll.u32 %s2330_s27, 4  ;;  %s312_s28 = int_to_ptr.vmem [resolvable:$true] %s2453_s28 }
  0x19   : > { %s2078_s11 = scalar_lea.hbm %s2784_s1, 1024 }
  0x1a   : > { %p2079_p12 = scmp.ne.s32.totalorder %s2784_s1, %s2078_s11  ;;  %p2463_p13 = pneg %p2447_p11 }
  0x1b   : > { %p2085_p5 = scmp.lt.u32.totalorder %s2078_s11, %s2784_s1 }
  0x1c   : > { %p2081_p0 = pnand %p2463_p13, %p2079_p12 }
  0x1e   : > { %p2082_p3 = pneg %p2081_p0 }
  0x20   : > { %p2087_p7 = pnand %p2085_p5, %p2082_p3 }
  0x22   : > { %2090 = shalt.err (!%p2087_p7)
}
  0x23   : > { %s2091_s29 = scalar_lea.vmem %s2440_s23, 1024  ;;  %p2099_p2 = scmp.lt.s32.totalorder %s2440_s23, %s2440_s23 }
  0x24   : > { %p2092_p9 = scmp.ne.s32.totalorder %s2440_s23, %s2091_s29  ;;  %p2100_p6 = scmp.lt.s32.totalorder %s2091_s29, %s2091_s29 }
  0x26   : > { %p2094_p10 = pnand %p2092_p9, %p2463_p13  ;;  %p2101_p12 = por %p2100_p6, %p2099_p2 }
  0x28   : > { %p2095_p1 = pneg %p2094_p10 }
  0x2a   : > { %p2102_p0 = pnand %p2101_p12, %p2095_p1 }
  0x2c   : > { %2105 = shalt.err (!%p2102_p0)
}
  0x2d   : > { %s2331_s30 = smov 64   ;;  %s2332_s11 = smov 4  }
  0x2e   : > { %1973 = dma.hbm_to_vmem [thread:$0]  (!%p2447_p11), %s2784_s1, 1024, %s2440_s23, [#allocation6], %s2331_s30, %s2331_s30, %s2332_s11  }
  0x2f   : > { %s2106_s29 = scalar_lea.hbm %s2788_s5, 1024 }
  0x30   : > { %p2107_p1 = scmp.ne.s32.totalorder %s2788_s5, %s2106_s29  ;;  %p2113_p10 = scmp.lt.u32.totalorder %s2106_s29, %s2788_s5 }
  0x32   : > { %p2109_p2 = pnand %p2107_p1, %p2463_p13 }
  0x34   : > { %p2110_p6 = pneg %p2109_p2 }
  0x36   : > { %p2115_p3 = pnand %p2113_p10, %p2110_p6 }
  0x38   : > { %2118 = shalt.err (!%p2115_p3)
}
  0x39   : > { %s2119_s23 = scalar_lea.vmem %s2451_s26, 1024  ;;  %p2127_p12 = scmp.lt.s32.totalorder %s2451_s26, %s2451_s26 }
  0x3a   : > { %p2120_p5 = scmp.ne.s32.totalorder %s2451_s26, %s2119_s23  ;;  %p2128_p0 = scmp.lt.s32.totalorder %s2119_s23, %s2119_s23 }
  0x3c   : > { %p2122_p7 = pnand %p2120_p5, %p2463_p13  ;;  %p2129_p1 = por %p2128_p0, %p2127_p12 }
  0x3e   : > { %p2123_p9 = pneg %p2122_p7 }
  0x40   : > { %p2130_p2 = pnand %p2129_p1, %p2123_p9 }
  0x42   : > { %2133 = shalt.err (!%p2130_p2)
}
  0x43   : > { %1979 = dma.hbm_to_vmem [thread:$0]  (!%p2447_p11), %s2788_s5, 1024, %s2451_s26, [#allocation9], %s2331_s30, %s2331_s30, %s2332_s11  }
  0x44   : > { %s2134_s12 = scalar_lea.hbm %s2786_s3, 1024 }
  0x45   : > { %p2135_p6 = scmp.ne.s32.totalorder %s2786_s3, %s2134_s12  ;;  %p2141_p5 = scmp.lt.u32.totalorder %s2134_s12, %s2786_s3 }
  0x47   : > { %p2137_p10 = pnand %p2135_p6, %p2463_p13 }
  0x49   : > { %p2138_p3 = pneg %p2137_p10 }
  0x4b   : > { %p2143_p7 = pnand %p2141_p5, %p2138_p3 }
  0x4d   : > { %2146 = shalt.err (!%p2143_p7)
}
  0x4e   : > { %s2147_s23 = scalar_lea.vmem %s312_s28, 1024  ;;  %p2155_p1 = scmp.lt.s32.totalorder %s312_s28, %s312_s28 }
  0x4f   : > { %p2148_p9 = scmp.ne.s32.totalorder %s312_s28, %s2147_s23  ;;  %p2156_p2 = scmp.lt.s32.totalorder %s2147_s23, %s2147_s23 }
  0x51   : > { %p2150_p12 = pnand %p2148_p9, %p2463_p13  ;;  %p2157_p4 = por %p2156_p2, %p2155_p1 }
  0x53   : > { %p2151_p0 = pneg %p2150_p12 }
  0x55   : > { %p2158_p8 = pnand %p2157_p4, %p2151_p0 }
  0x57   : > { %2161 = shalt.err (!%p2158_p8)
}
  0x58   : > { %1976 = dma.hbm_to_vmem [thread:$0]  (!%p2447_p11), %s2786_s3, 1024, %s312_s28, [#allocation6], %s2331_s30, %s2331_s30, %s2332_s11  }
  0x59   : > { %s2333_s10 = smov [#allocation10]   ;;  %s2162_s18 = scalar_lea.hbm %s2790_s7, 1024 }
  0x5a   : > { %s343_s13 = sshll.u32 %s2333_s10, 4  ;;  %p2163_p4 = scmp.ne.s32.totalorder %s2790_s7, %s2162_s18  ;;  %s344_s13 = int_to_ptr.vmem [resolvable:$true] %s343_s13 }
  0x5b   : > { %p2169_p10 = scmp.lt.u32.totalorder %s2162_s18, %s2790_s7 }
  0x5c   : > { %p2165_p8 = pnand %p2163_p4, %p2463_p13 }
  0x5e   : > { %p2166_p6 = pneg %p2165_p8 }
  0x60   : > { %p2171_p3 = pnand %p2169_p10, %p2166_p6 }
  0x62   : > { %2174 = shalt.err (!%p2171_p3)
}
  0x63   : > { %s2175_s28 = scalar_lea.vmem %s344_s13, 1024  ;;  %p2183_p12 = scmp.lt.s32.totalorder %s344_s13, %s344_s13 }
  0x64   : > { %p2176_p5 = scmp.ne.s32.totalorder %s344_s13, %s2175_s28  ;;  %p2184_p0 = scmp.lt.s32.totalorder %s2175_s28, %s2175_s28 }
  0x66   : > { %p2178_p7 = pnand %p2176_p5, %p2463_p13  ;;  %p2185_p1 = por %p2184_p0, %p2183_p12 }
  0x68   : > { %p2179_p9 = pneg %p2178_p7 }
  0x6a   : > { %p2186_p2 = pnand %p2185_p1, %p2179_p9 }
  0x6c   : > { %2189 = shalt.err (!%p2186_p2)
}
  0x6d   : > { %1982 = dma.hbm_to_vmem [thread:$0]  (!%p2447_p11), %s2790_s7, 1024, %s344_s13, [#allocation9], %s2331_s30, %s2331_s30, %s2332_s11  }
  0x6e   : > { %s2557_s22 = sadd.s32 1, %s2326_s16   ;;  %s39_s24 = sadd.s32 1, %s2322_s15 }
  0x6f   : > { %s36_s10 = ssub.s32 %s2326_s16, %s2557_s22  ;;  %p46_p13 = scmp.ne.s32.totalorder %s2322_s15, %s2318_s14 }
  0x70   : > { %p37_p4 = scmp.eq.s32.totalorder %s36_s10, 0  ;;  %p47_p8 = scmp.eq.s32.totalorder %s2326_s16, 0 }
  0x71   : > { %p2809_p6 = scmp.eq.s32.totalorder %s2417_s17, 1  ;;  %p1998_p3 = scmp.lt.s32.totalorder %s2326_s16, 2 }
  0x72   : > { %s2573_s12 = scalar_select %p37_p4, %s2322_s15, %s39_s24  }
  0x73   : > { %p2567_p10 = por %p2809_p6, %p46_p13  ;;  %p48_p5 = por %p47_p8, %p46_p13 }
  0x74   : > { %s360_s18 = sand.u32 1, %s2322_s15   ;;  %s1627_s30 = sshll.u32 %s2326_s16, 11 }
  0x75   : > { %s1540_s25 = sshll.u32 %s360_s18, 7  ;;  %s2580_s27 = scalar_lea.hbm %s2783_s0, %s1627_s30 }
  0x76   : > { %s364_s29 = scalar_lea.vmem [#allocation2], %s1540_s25  ;;  %p2584_p11 = pnand %p1998_p3, %p48_p5 }
  0x77   : > { %s371_s23 = sshll.u32 %s364_s29, 4  ;;  %s2588_s26 = scalar_lea.sflag [#allocation3], %s360_s18  ;;  %s2582_s23 = int_to_ptr.vmem [resolvable:$true] %s371_s23 }
  0x78   : > { %s2190_s8 = scalar_lea.hbm %s2580_s27, 2048  ;;  %p2192_p9 = pneg %p2584_p11 }
  0x79   : > { %p2191_p7 = scmp.ne.s32.totalorder %s2580_s27, %s2190_s8  ;;  %s2195_s25 = scalar_lea.hbm %s2783_s0, 4096 }
  0x7a   : > { %p2196_p1 = scmp.lt.u32.totalorder %s2580_s27, %s2783_s0  ;;  %p2197_p2 = scmp.lt.u32.totalorder %s2195_s25, %s2190_s8 }
  0x7b   : > { %p2193_p12 = pnand %p2192_p9, %p2191_p7  ;;  %p2199_p4 = scmp.lt.u32.totalorder %s2190_s8, %s2580_s27 }
  0x7c   : > { %p2198_p13 = por %p2197_p2, %p2196_p1 }
  0x7d   : > { %p2194_p0 = pneg %p2193_p12 }
  0x7e   : > { %p2200_p8 = por %p2199_p4, %p2198_p13 }
  0x80   : > { %p2201_p6 = pnand %p2200_p8, %p2194_p0 }
  0x82   : > { %2204 = shalt.err (!%p2201_p6)
}
  0x83   : > { %s2205_s18 = scalar_lea.vmem %s2582_s23, 2048  ;;  %s2334_s13 = smov [#allocation2]  }
  0x84   : > { %p2206_p3 = scmp.ne.s32.totalorder %s2582_s23, %s2205_s18  ;;  %s2210_s29 = sshll.u32 %s2334_s13, 4  ;;  %s2211_s29 = int_to_ptr.vmem [resolvable:$false] %s2210_s29 }
  0x85   : > { %s2212_s24 = scalar_lea.vmem %s2211_s29, 4096  ;;  %p2213_p12 = scmp.lt.s32.totalorder %s2582_s23, %s2211_s29 }
  0x86   : > { %p2208_p5 = pnand %p2206_p3, %p2192_p9  ;;  %p2214_p1 = scmp.lt.s32.totalorder %s2212_s24, %s2205_s18 }
  0x88   : > { %p2209_p7 = pneg %p2208_p5  ;;  %p2215_p2 = por %p2214_p1, %p2213_p12 }
  0x8a   : > { %p2216_p13 = pnand %p2215_p2, %p2209_p7 }
  0x8c   : > { %2219 = shalt.err (!%p2216_p13)
}
  0x8d   : > { %s2335_s8 = smov 128   ;;  %s2336_s10 = smov 8  }
  0x8e   : > { %1986 = dma.hbm_to_vmem [thread:$0]  (!%p2584_p11), %s2580_s27, 2048, %s2582_s23, %s2588_s26, %s2335_s8, %s2335_s8, %s2336_s10  }
  0x8f   : > { %p2812_p9 = scmp.ne.s32.totalorder %s2806_s21, 0 }
  0x90   : > { %s2619_s25 = sand.u32 (!%p2812_p9), 1, %s2318_s14   ;;  %p2813_p0 = scmp.ne.s32.totalorder (!%p2812_p9), %s2803_s19, 0 }
  0x91   : > { %383 = sbr.rel (%p2812_p9) target bundleno = 1114 (0x45a), region = 56  ;;  %s1544_s30 = sshll.u32 (!%p2812_p9), %s2619_s25, 7 }
  0x92   : > { %s386_s11 = scalar_lea.sflag (!%p2812_p9), [#allocation3], %s2619_s25  ;;  %s2623_s18 = scalar_lea.vmem (!%p2812_p9), [#allocation2], %s1544_s30 }
  0x98   : > { %2293 = dma.done.wait (%p2813_p0), %s386_s11, 2048  }
  0x99   : > { %2295 = vsyncadd (%p2813_p0), %s386_s11, 4294965248  ;;  %p2814_p11 = scmp.eq.s32.totalorder %s2417_s17, 0 }
  0x9b   : > { %2297 = dma.done.wait (%p2814_p11), [#allocation6], 2048   ;;  %p2815_p4 = pmov %p2814_p11 }
  0x9d   : > { %2299 = vsyncadd (%p2815_p4), [#allocation6], 4294965248  ;;  %p2816_p8 = pmov %p2815_p4 }
  0x9e   : > { %p2817_p6 = pmov %p2815_p4 }
  0x9f   : > { %2301 = dma.done.wait (%p2816_p8), [#allocation9], 2048  }
  0xa0   : > { %2303 = vsyncadd (%p2817_p6), [#allocation9], 4294965248  ;;  %v2046_v0 = vld [vmem:[#allocation5] sm:$0xff]   ;;  %v2047_v1 = vld [vmem:[#allocation5 + $0x8] sm:$0xff]   ;;  %s1549_s28 = sshll.u32 %s2619_s25, 6  ;;  %s1660_s8 = sshll.u32 %s2417_s17, 10 }
  0xa1   : > { %1820 = vmatprep.subr.bf16.mxu0 %v2046_v0  ;;  %v2048_v2 = vld [vmem:[#allocation5 + $0x10] sm:$0xff]   ;;  %v2049_v3 = vld [vmem:[#allocation5 + $0x18] sm:$0xff]   ;;  %v451_v4 = vld [vmem:[%s2623_s18] sm:$0xff]  ;;  %s2662_s26 = scalar_lea.vmem [#allocation11], %s1549_s28  ;;  %s2684_s11 = scalar_lea.hbm %s2792_s9, %s1660_s8 }
  0xa2   : > { %1821 = vmatpush3.bf16.msra.mxu0 %v2046_v0  ;;  %v452_v5 = vld [vmem:[%s2623_s18 + $0x8] sm:$0xff]  ;;  %v2050_v7 = vld [vmem:[#allocation5 + $0x20] sm:$0xff]   ;;  %v2056_v11 = vld [vmem:[#allocation7 + $0x10] sm:$0xff]   ;;  %s1374_s24 = sshll.u32 %s2662_s26, 4  ;;  %s2337_s21 = smov [#allocation11]   ;;  %s2676_s24 = int_to_ptr.vmem [resolvable:$true] %s1374_s24 }
  0xa3   : > { %1822 = vmatprep.subr.bf16.mxu0 %v2047_v1  ;;  %v467_v6 = vpack.c.bf16 %v452_v5, %v451_v4  ;;  %v2054_v8 = vld [vmem:[#allocation7] sm:$0xff]   ;;  %v2055_v9 = vld [vmem:[#allocation7 + $0x8] sm:$0xff]   ;;  %v2052_v12 = vld [vmem:[#allocation5 + $0x30] sm:$0xff]   ;;  %s2220_s19 = scalar_lea.vmem %s2676_s24, 1024  ;;  %s2224_s27 = sshll.u32 %s2337_s21, 4  ;;  %s2225_s27 = int_to_ptr.vmem [resolvable:$false] %s2224_s27 }
  0xa4   : > { %v2051_v10 = vld [vmem:[#allocation5 + $0x28] sm:$0xff]   ;;  %1852 = vmatprep.subr.bf16.mxu1 %v2054_v8  ;;  %v2057_v13 = vld [vmem:[#allocation7 + $0x18] sm:$0xff]   ;;  %v2058_v15 = vld [vmem:[#allocation7 + $0x20] sm:$0xff]   ;;  %p2221_p3 = scmp.ne.s32.totalorder %s2676_s24, %s2220_s19  ;;  %s2226_s23 = scalar_lea.vmem %s2225_s27, 2048 }
  0xa5   : > { %1836 = vmatprep.mubr.bf16.mxu0 %v467_v6  ;;  %1853 = vmatpush3.bf16.msra.mxu1 %v2054_v8  ;;  %v2053_v14 = vld [vmem:[#allocation5 + $0x38] sm:$0xff]   ;;  %v453_v16 = vld [vmem:[%s2623_s18 + $0x10] sm:$0xff]  ;;  %v455_v18 = vld [vmem:[%s2623_s18 + $0x20] sm:$0xff]  ;;  %p2227_p12 = scmp.lt.s32.totalorder %s2676_s24, %s2225_s27  ;;  %p2228_p1 = scmp.lt.s32.totalorder %s2226_s23, %s2220_s19 }
  0xa6   : > { %1823 = vmatpush3.bf16.msra.mxu0 %v2047_v1  ;;  %1854 = vmatprep.subr.bf16.mxu1 %v2055_v9  ;;  %v454_v17 = vld [vmem:[%s2623_s18 + $0x18] sm:$0xff]  ;;  %v456_v19 = vld [vmem:[%s2623_s18 + $0x28] sm:$0xff]  ;;  %v457_v23 = vld [vmem:[%s2623_s18 + $0x30] sm:$0xff]  ;;  %p2222_p5 = pnand %p2221_p3, %p2567_p10 }
  0xa7   : > { %1824 = vmatprep.subr.bf16.mxu0 %v2048_v2  ;;  %v2059_v20 = vld [vmem:[#allocation7 + $0x28] sm:$0xff]   ;;  %v468_v21 = vpack.c.bf16 %v454_v17, %v453_v16  ;;  %v469_v22 = vpack.c.bf16 %v456_v19, %v455_v18  ;;  %v458_v24 = vld [vmem:[%s2623_s18 + $0x38] sm:$0xff]  ;;  %v459_v25 = vld [vmem:[%s2623_s18 + $0x40] sm:$0xff]  ;;  %p2229_p2 = por %p2228_p1, %p2227_p12 }
  0xa8   : > { %v460_v26 = vld [vmem:[%s2623_s18 + $0x48] sm:$0xff]  ;;  %v470_v27 = vpack.c.bf16 %v458_v24, %v457_v23  ;;  %v461_v29 = vld [vmem:[%s2623_s18 + $0x50] sm:$0xff]  ;;  %v462_v30 = vld [vmem:[%s2623_s18 + $0x58] sm:$0xff]  ;;  %p2223_p7 = pneg %p2222_p5 }
  0xa9   : > { %1855 = vmatpush3.bf16.msra.mxu1 %v2055_v9  ;;  %v471_v28 = vpack.c.bf16 %v460_v26, %v459_v25  ;;  %v463_v31 = vld [vmem:[%s2623_s18 + $0x60] sm:$0xff]  ;;  %v464_v32 = vld [vmem:[%s2623_s18 + $0x68] sm:$0xff]  ;;  %v472_v33 = vpack.c.bf16 %v462_v30, %v461_v29  ;;  %v465_v35 = vld [vmem:[%s2623_s18 + $0x70] sm:$0xff] }
  0xaa   : > { %1825 = vmatpush3.bf16.msra.mxu0 %v2048_v2  ;;  %1856 = vmatprep.subr.bf16.mxu1 %v2056_v11  ;;  %v473_v34 = vpack.c.bf16 %v464_v32, %v463_v31  ;;  %v466_v36 = vld [vmem:[%s2623_s18 + $0x78] sm:$0xff]  ;;  %v2060_v38 = vld [vmem:[#allocation7 + $0x30] sm:$0xff]   ;;  %v2062_v40 = vld [vmem:[#allocation8] sm:$0xff]   ;;  %s1356_s18 = scalar_lea.sflag [#allocation4], %s2619_s25  ;;  %p2230_p13 = pnand %p2229_p2, %p2223_p7 }
  0xab   : > { %1826 = vmatprep.subr.bf16.mxu0 %v2049_v3  ;;  %v474_v37 = vpack.c.bf16 %v466_v36, %v465_v35  ;;  %v2061_v39 = vld [vmem:[#allocation7 + $0x38] sm:$0xff]   ;;  %v2063_v41 = vld [vmem:[#allocation8 + $0x8] sm:$0xff]   ;;  %v2064_v42 = vld [vmem:[#allocation8 + $0x10] sm:$0xff]  }
  0xac   : > { %v2065_v43 = vld [vmem:[#allocation8 + $0x18] sm:$0xff]   ;;  %v2066_v44 = vld [vmem:[#allocation8 + $0x20] sm:$0xff]   ;;  %v2067_v45 = vld [vmem:[#allocation8 + $0x28] sm:$0xff]  }
  0xad   : > { %1857 = vmatpush3.bf16.msra.mxu1 %v2056_v11  ;;  %v1551_v46 = vld [vmem:[%s2785_s2] ss:$0 sm:$0xff] }
  0xae   : > { %1827 = vmatpush3.bf16.msra.mxu0 %v2049_v3  ;;  %1858 = vmatprep.subr.bf16.mxu1 %v2057_v13 }
  0xaf   : > { %1828 = vmatprep.subr.bf16.mxu0 %v2050_v7 }
  0xb1   : > { %1859 = vmatpush3.bf16.msra.mxu1 %v2057_v13 }
  0xb2   : > { %1829 = vmatpush3.bf16.msra.mxu0 %v2050_v7  ;;  %1860 = vmatprep.subr.bf16.mxu1 %v2058_v15 }
  0xb3   : > { %1830 = vmatprep.subr.bf16.mxu0 %v2051_v10 }
  0xb5   : > { %1861 = vmatpush3.bf16.msra.mxu1 %v2058_v15 }
  0xb6   : > { %1831 = vmatpush3.bf16.msra.mxu0 %v2051_v10  ;;  %1862 = vmatprep.subr.bf16.mxu1 %v2059_v20 }
  0xb7   : > { %1832 = vmatprep.subr.bf16.mxu0 %v2052_v12 }
  0xb9   : > { %1863 = vmatpush3.bf16.msra.mxu1 %v2059_v20 }
  0xba   : > { %1833 = vmatpush3.bf16.msra.mxu0 %v2052_v12  ;;  %1864 = vmatprep.subr.bf16.mxu1 %v2060_v38 }
  0xbb   : > { %1834 = vmatprep.subr.bf16.mxu0 %v2053_v14 }
  0xbd   : > { %1865 = vmatpush3.bf16.msra.mxu1 %v2060_v38 }
  0xbe   : > { %1835 = vmatpush3.bf16.msra.mxu0 %v2053_v14  ;;  %1866 = vmatprep.subr.bf16.mxu1 %v2061_v39 }
  0xbf   : > { %1884 = vmatprep.subr.bf16.mxu0 %v2062_v40 }
  0xc1   : > { %1837 = vmatmul.mubr.bf16.vlgmr.msra.gmra.mrb[0].mxu0 %v468_v21  ;;  %1867 = vmatpush3.bf16.msra.mxu1 %v2061_v39  ;;  %v2068_v39 = vld [vmem:[#allocation8 + $0x30] sm:$0xff]  }
  0xc2   : > { %1840 = vmatprep.mubr.bf16.mxu0 %v469_v22  ;;  %1885 = vmatpush3.bf16.msra.mxu0 %v2062_v40  ;;  %v2069_v40 = vld [vmem:[#allocation8 + $0x38] sm:$0xff]  }
  0xc3   : > { %1886 = vmatprep.subr.bf16.mxu0 %v2063_v41 }
  0xc6   : > { %1887 = vmatpush3.bf16.msra.mxu0 %v2063_v41  ;;  %v2070_v41 = vld [vmem:[#allocation10] sm:$0xff]  }
  0xc7   : > { %1888 = vmatprep.subr.bf16.mxu0 %v2064_v42  ;;  %1916 = vmatprep.subr.bf16.mxu1 %v2070_v41 }
  0xc9   : > { %1841 = vmatmul.mubr.bf16.gmra.mrb[4].mxu0 %v470_v27 }
  0xca   : > { %1844 = vmatprep.mubr.bf16.mxu0 %v471_v28  ;;  %1889 = vmatpush3.bf16.msra.mxu0 %v2064_v42  ;;  %v2071_v42 = vld [vmem:[#allocation10 + $0x8] sm:$0xff]  }
  0xcb   : > { %1890 = vmatprep.subr.bf16.mxu0 %v2065_v43 }
  0xce   : > { %1891 = vmatpush3.bf16.msra.mxu0 %v2065_v43  ;;  %v2072_v43 = vld [vmem:[#allocation10 + $0x10] sm:$0xff]  }
  0xcf   : > { %1892 = vmatprep.subr.bf16.mxu0 %v2066_v44 }
  0xd1   : > { %1845 = vmatmul.mubr.bf16.gmra.mrb[8].mxu0 %v472_v33 }
  0xd2   : > { %1848 = vmatprep.mubr.bf16.mxu0 %v473_v34  ;;  %1893 = vmatpush3.bf16.msra.mxu0 %v2066_v44  ;;  %v2073_v44 = vld [vmem:[#allocation10 + $0x18] sm:$0xff]  }
  0xd3   : > { %1894 = vmatprep.subr.bf16.mxu0 %v2067_v45 }
  0xd6   : > { %1895 = vmatpush3.bf16.msra.mxu0 %v2067_v45  ;;  %v2074_v45 = vld [vmem:[#allocation10 + $0x20] sm:$0xff]  }
  0xd7   : > { %1896 = vmatprep.subr.bf16.mxu0 %v2068_v39 }
  0xd9   : > { %1849 = vmatmul.mubr.bf16.gmra.mrb[12].mxu0 %v474_v37 }
  0xda   : > { %1897 = vmatpush3.bf16.msra.mxu0 %v2068_v39 }
  0xdb   : > { %1898 = vmatprep.subr.bf16.mxu0 %v2069_v40 }
  0xde   : > { %1899 = vmatpush3.bf16.msra.mxu0 %v2069_v40 }
 0x194   : > { %v1838_v47 = vpop.f32.mrb[0].mxu0 }
 0x195   : > { %v589_v48 = vadd.f32 %v1838_v47, %v1551_v46  ;;  %v580_v49 = vpop.f32.mrb[1].mxu0 }
 0x196   : > { %v581_v50 = vadd.f32 %v1551_v46, %v580_v49  ;;  %v1839_v51 = vpop.f32.mrb[2].mxu0 }
 0x197   : > { %v592_v52 = vadd.f32 %v1839_v51, %v1551_v46  ;;  %v583_v53 = vpop.f32.mrb[3].mxu0  ;;  %v645_v55 = vmax.f32 %v589_v48, 0.0  ;;  %v1560_v48 = vld [vmem:[%s2787_s4] ss:$0 sm:$0xff] }
 0x198   : > { %v584_v54 = vadd.f32 %v1551_v46, %v583_v53  ;;  %v643_v57 = vmax.f32 %v581_v50, 0.0 }
 0x199   : > { %v646_v56 = vmax.f32 %v592_v52, 0.0 }
 0x19a   : > { %v644_v58 = vmax.f32 %v584_v54, 0.0 }
 0x19b   : > { %v660_v59 = vpack.c.bf16 %v646_v56, %v645_v55 }
 0x19c   : > { %v1842_v60 = vpop.f32.mrb[4].mxu0  ;;  %v659_v61 = vpack.c.bf16 %v644_v58, %v643_v57 }
 0x19d   : > { %v605_v62 = vadd.f32 %v1842_v60, %v1551_v46  ;;  %v596_v63 = vpop.f32.mrb[5].mxu0 }
 0x19e   : > { %v597_v0 = vadd.f32 %v1551_v46, %v596_v63  ;;  %v1843_v1 = vpop.f32.mrb[6].mxu0  ;;  %1868 = vmatprep.mubr.bf16.mxu1 %v659_v61 }
 0x19f   : > { %v608_v2 = vadd.f32 %v1843_v1, %v1551_v46  ;;  %v599_v3 = vpop.f32.mrb[7].mxu0  ;;  %1869 = vmatmul.mubr.bf16.vlgmr.msra.gmra.mrb[0].mxu1 %v660_v59  ;;  %v649_v5 = vmax.f32 %v605_v62, 0.0 }
 0x1a0   : > { %v600_v4 = vadd.f32 %v1551_v46, %v599_v3  ;;  %v647_v7 = vmax.f32 %v597_v0, 0.0  ;;  %1917 = vmatpush3.bf16.msra.mxu1 %v2070_v41 }
 0x1a1   : > { %v650_v6 = vmax.f32 %v608_v2, 0.0  ;;  %1918 = vmatprep.subr.bf16.mxu1 %v2071_v42 }
 0x1a2   : > { %v648_v8 = vmax.f32 %v600_v4, 0.0 }
 0x1a3   : > { %v662_v9 = vpack.c.bf16 %v650_v6, %v649_v5 }
 0x1a4   : > { %v661_v10 = vpack.c.bf16 %v648_v8, %v647_v7  ;;  %v1846_v11 = vpop.f32.mrb[8].mxu0  ;;  %1919 = vmatpush3.bf16.msra.mxu1 %v2071_v42 }
 0x1a5   : > { %v621_v12 = vadd.f32 %v1846_v11, %v1551_v46  ;;  %v612_v13 = vpop.f32.mrb[9].mxu0  ;;  %1920 = vmatprep.subr.bf16.mxu1 %v2072_v43 }
 0x1a6   : > { %v613_v14 = vadd.f32 %v1551_v46, %v612_v13  ;;  %v1847_v15 = vpop.f32.mrb[10].mxu0  ;;  %1872 = vmatprep.mubr.bf16.mxu1 %v661_v10 }
 0x1a7   : > { %v624_v16 = vadd.f32 %v1847_v15, %v1551_v46  ;;  %v615_v17 = vpop.f32.mrb[11].mxu0  ;;  %1873 = vmatmul.mubr.bf16.gmra.mrb[4].mxu1 %v662_v9  ;;  %v653_v19 = vmax.f32 %v621_v12, 0.0 }
 0x1a8   : > { %v616_v18 = vadd.f32 %v1551_v46, %v615_v17  ;;  %v651_v21 = vmax.f32 %v613_v14, 0.0  ;;  %1921 = vmatpush3.bf16.msra.mxu1 %v2072_v43 }
 0x1a9   : > { %v654_v20 = vmax.f32 %v624_v16, 0.0  ;;  %1922 = vmatprep.subr.bf16.mxu1 %v2073_v44 }
 0x1aa   : > { %v652_v22 = vmax.f32 %v616_v18, 0.0 }
 0x1ab   : > { %v664_v23 = vpack.c.bf16 %v654_v20, %v653_v19 }
 0x1ac   : > { %v663_v24 = vpack.c.bf16 %v652_v22, %v651_v21  ;;  %v1850_v25 = vpop.f32.mrb[12].mxu0  ;;  %1923 = vmatpush3.bf16.msra.mxu1 %v2073_v44 }
 0x1ad   : > { %v637_v26 = vadd.f32 %v1850_v25, %v1551_v46  ;;  %v628_v27 = vpop.f32.mrb[13].mxu0  ;;  %1924 = vmatprep.subr.bf16.mxu1 %v2074_v45  ;;  %v2077_v25 = vld [vmem:[#allocation10 + $0x38] sm:$0xff]  }
 0x1ae   : > { %v629_v28 = vadd.f32 %v1551_v46, %v628_v27  ;;  %v1851_v29 = vpop.f32.mrb[14].mxu0  ;;  %1876 = vmatprep.mubr.bf16.mxu1 %v663_v24  ;;  %v2076_v24 = vld [vmem:[#allocation10 + $0x30] sm:$0xff]  }
 0x1af   : > { %v640_v30 = vadd.f32 %v1851_v29, %v1551_v46  ;;  %v631_v31 = vpop.f32.mrb[15].mxu0  ;;  %1877 = vmatmul.mubr.bf16.gmra.mrb[8].mxu1 %v664_v23  ;;  %v657_v33 = vmax.f32 %v637_v26, 0.0  ;;  %v1569_v26 = vld [vmem:[%s2789_s6] ss:$0 sm:$0xff] }
 0x1b0   : > { %v632_v32 = vadd.f32 %v1551_v46, %v631_v31  ;;  %v655_v35 = vmax.f32 %v629_v28, 0.0  ;;  %v2075_v46 = vld [vmem:[#allocation10 + $0x28] sm:$0xff]   ;;  %1925 = vmatpush3.bf16.msra.mxu1 %v2074_v45 }
 0x1b1   : > { %v658_v34 = vmax.f32 %v640_v30, 0.0  ;;  %1926 = vmatprep.subr.bf16.mxu1 %v2075_v46 }
 0x1b2   : > { %v656_v36 = vmax.f32 %v632_v32, 0.0 }
 0x1b3   : > { %v666_v37 = vpack.c.bf16 %v658_v34, %v657_v33 }
 0x1b4   : > { %v665_v38 = vpack.c.bf16 %v656_v36, %v655_v35  ;;  %1927 = vmatpush3.bf16.msra.mxu1 %v2075_v46 }
 0x1b5   : > { %1928 = vmatprep.subr.bf16.mxu1 %v2076_v24 }
 0x1b6   : > { %1880 = vmatprep.mubr.bf16.mxu1 %v665_v38 }
 0x1b7   : > { %1881 = vmatmul.mubr.bf16.gmra.mrb[12].mxu1 %v666_v37 }
 0x1b8   : > { %1929 = vmatpush3.bf16.msra.mxu1 %v2076_v24 }
 0x1b9   : > { %1930 = vmatprep.subr.bf16.mxu1 %v2077_v25 }
 0x1bc   : > { %1931 = vmatpush3.bf16.msra.mxu1 %v2077_v25 }
 0x272   : > { %v1870_v47 = vpop.f32.mrb[0].mxu1 }
 0x273   : > { %v772_v49 = vpop.f32.mrb[1].mxu1  ;;  %v781_v51 = vadd.f32 %v1870_v47, %v1560_v48 }
 0x274   : > { %v1871_v50 = vpop.f32.mrb[2].mxu1  ;;  %v773_v54 = vadd.f32 %v1560_v48, %v772_v49 }
 0x275   : > { %v784_v52 = vadd.f32 %v1871_v50, %v1560_v48  ;;  %v775_v53 = vpop.f32.mrb[3].mxu1 }
 0x276   : > { %v776_v55 = vadd.f32 %v1560_v48, %v775_v53 }
 0x277   : > { %v836_v56 = vpack.c.bf16 %v784_v52, %v781_v51 }
 0x278   : > { %v835_v57 = vpack.c.bf16 %v776_v55, %v773_v54 }
 0x279   : > { %1742 = vst [vmem:[%s2662_s26 + $0x8] sm:$0xff] %v836_v56  }
 0x27a   : > { %1666 = vst [vmem:[%s2662_s26] sm:$0xff] %v835_v57   ;;  %v1874_v58 = vpop.f32.mrb[4].mxu1  ;;  %1900 = vmatprep.mubr.bf16.mxu0 %v835_v57 }
 0x27b   : > { %v788_v59 = vpop.f32.mrb[5].mxu1  ;;  %1901 = vmatmul.mubr.bf16.vlgmr.msra.gmra.mrb[16].mxu0 %v836_v56  ;;  %v797_v61 = vadd.f32 %v1874_v58, %v1560_v48 }
 0x27c   : > { %v1875_v60 = vpop.f32.mrb[6].mxu1  ;;  %v789_v0 = vadd.f32 %v1560_v48, %v788_v59 }
 0x27d   : > { %v800_v62 = vadd.f32 %v1875_v60, %v1560_v48  ;;  %v791_v63 = vpop.f32.mrb[7].mxu1 }
 0x27e   : > { %v792_v1 = vadd.f32 %v1560_v48, %v791_v63 }
 0x27f   : > { %v838_v2 = vpack.c.bf16 %v800_v62, %v797_v61 }
 0x280   : > { %v837_v3 = vpack.c.bf16 %v792_v1, %v789_v0 }
 0x281   : > { %1744 = vst [vmem:[%s2662_s26 + $0x18] sm:$0xff] %v838_v2  }
 0x282   : > { %1743 = vst [vmem:[%s2662_s26 + $0x10] sm:$0xff] %v837_v3   ;;  %v1878_v4 = vpop.f32.mrb[8].mxu1  ;;  %1904 = vmatprep.mubr.bf16.mxu0 %v837_v3 }
 0x283   : > { %v804_v5 = vpop.f32.mrb[9].mxu1  ;;  %1905 = vmatmul.mubr.bf16.gmra.mrb[20].mxu0 %v838_v2  ;;  %v813_v7 = vadd.f32 %v1878_v4, %v1560_v48 }
 0x284   : > { %v1879_v6 = vpop.f32.mrb[10].mxu1  ;;  %v805_v10 = vadd.f32 %v1560_v48, %v804_v5 }
 0x285   : > { %v816_v8 = vadd.f32 %v1879_v6, %v1560_v48  ;;  %v807_v9 = vpop.f32.mrb[11].mxu1 }
 0x286   : > { %v808_v11 = vadd.f32 %v1560_v48, %v807_v9 }
 0x287   : > { %v840_v12 = vpack.c.bf16 %v816_v8, %v813_v7 }
 0x288   : > { %v839_v13 = vpack.c.bf16 %v808_v11, %v805_v10 }
 0x289   : > { %1746 = vst [vmem:[%s2662_s26 + $0x28] sm:$0xff] %v840_v12  }
 0x28a   : > { %1745 = vst [vmem:[%s2662_s26 + $0x20] sm:$0xff] %v839_v13   ;;  %v1882_v14 = vpop.f32.mrb[12].mxu1  ;;  %1908 = vmatprep.mubr.bf16.mxu0 %v839_v13 }
 0x28b   : > { %v820_v15 = vpop.f32.mrb[13].mxu1  ;;  %1909 = vmatmul.mubr.bf16.gmra.mrb[24].mxu0 %v840_v12  ;;  %v829_v17 = vadd.f32 %v1882_v14, %v1560_v48 }
 0x28c   : > { %v1883_v16 = vpop.f32.mrb[14].mxu1  ;;  %v821_v20 = vadd.f32 %v1560_v48, %v820_v15 }
 0x28d   : > { %v832_v18 = vadd.f32 %v1883_v16, %v1560_v48  ;;  %v823_v19 = vpop.f32.mrb[15].mxu1 }
 0x28e   : > { %v824_v21 = vadd.f32 %v1560_v48, %v823_v19 }
 0x28f   : > { %v842_v22 = vpack.c.bf16 %v832_v18, %v829_v17 }
 0x290   : > { %v841_v23 = vpack.c.bf16 %v824_v21, %v821_v20 }
 0x291   : > { %1748 = vst [vmem:[%s2662_s26 + $0x38] sm:$0xff] %v842_v22  }
 0x292   : > { %1747 = vst [vmem:[%s2662_s26 + $0x30] sm:$0xff] %v841_v23   ;;  %1912 = vmatprep.mubr.bf16.mxu0 %v841_v23 }
 0x293   : > { %1913 = vmatmul.mubr.bf16.gmra.mrb[28].mxu0 %v842_v22 }
 0x34e   : > { %v1902_v27 = vpop.f32.mrb[16].mxu0 }
 0x34f   : > { %v957_v28 = vadd.f32 %v1902_v27, %v1569_v26  ;;  %v948_v29 = vpop.f32.mrb[17].mxu0 }
 0x350   : > { %v949_v30 = vadd.f32 %v1569_v26, %v948_v29  ;;  %v1903_v31 = vpop.f32.mrb[18].mxu0 }
 0x351   : > { %v960_v32 = vadd.f32 %v1903_v31, %v1569_v26  ;;  %v951_v33 = vpop.f32.mrb[19].mxu0  ;;  %v1013_v35 = vmax.f32 %v957_v28, 0.0 }
 0x352   : > { %v952_v34 = vadd.f32 %v1569_v26, %v951_v33  ;;  %v1011_v37 = vmax.f32 %v949_v30, 0.0 }
 0x353   : > { %v1014_v36 = vmax.f32 %v960_v32, 0.0 }
 0x354   : > { %v1012_v38 = vmax.f32 %v952_v34, 0.0 }
 0x355   : > { %v1028_v39 = vpack.c.bf16 %v1014_v36, %v1013_v35 }
 0x356   : > { %v1027_v40 = vpack.c.bf16 %v1012_v38, %v1011_v37  ;;  %v1906_v41 = vpop.f32.mrb[20].mxu0 }
 0x357   : > { %v973_v42 = vadd.f32 %v1906_v41, %v1569_v26  ;;  %v964_v43 = vpop.f32.mrb[21].mxu0 }
 0x358   : > { %v965_v44 = vadd.f32 %v1569_v26, %v964_v43  ;;  %v1907_v45 = vpop.f32.mrb[22].mxu0  ;;  %1932 = vmatprep.mubr.bf16.mxu1 %v1027_v40 }
 0x359   : > { %v976_v46 = vadd.f32 %v1907_v45, %v1569_v26  ;;  %v967_v47 = vpop.f32.mrb[23].mxu0  ;;  %1933 = vmatmul.mubr.bf16.vlgmr.msra.gmra.mrb[16].mxu1 %v1028_v39  ;;  %v1017_v49 = vmax.f32 %v973_v42, 0.0 }
 0x35a   : > { %v968_v48 = vadd.f32 %v1569_v26, %v967_v47  ;;  %v1015_v51 = vmax.f32 %v965_v44, 0.0 }
 0x35b   : > { %v1018_v50 = vmax.f32 %v976_v46, 0.0 }
 0x35c   : > { %v1016_v52 = vmax.f32 %v968_v48, 0.0 }
 0x35d   : > { %v1030_v53 = vpack.c.bf16 %v1018_v50, %v1017_v49 }
 0x35e   : > { %v1029_v54 = vpack.c.bf16 %v1016_v52, %v1015_v51  ;;  %v1910_v55 = vpop.f32.mrb[24].mxu0 }
 0x35f   : > { %v989_v56 = vadd.f32 %v1910_v55, %v1569_v26  ;;  %v980_v57 = vpop.f32.mrb[25].mxu0 }
 0x360   : > { %v981_v58 = vadd.f32 %v1569_v26, %v980_v57  ;;  %v1911_v59 = vpop.f32.mrb[26].mxu0  ;;  %1936 = vmatprep.mubr.bf16.mxu1 %v1029_v54 }
 0x361   : > { %v992_v60 = vadd.f32 %v1911_v59, %v1569_v26  ;;  %v983_v61 = vpop.f32.mrb[27].mxu0  ;;  %1937 = vmatmul.mubr.bf16.gmra.mrb[20].mxu1 %v1030_v53  ;;  %v1021_v63 = vmax.f32 %v989_v56, 0.0 }
 0x362   : > { %v984_v62 = vadd.f32 %v1569_v26, %v983_v61  ;;  %v1019_v1 = vmax.f32 %v981_v58, 0.0 }
 0x363   : > { %v1022_v0 = vmax.f32 %v992_v60, 0.0 }
 0x364   : > { %v1020_v2 = vmax.f32 %v984_v62, 0.0 }
 0x365   : > { %v1032_v3 = vpack.c.bf16 %v1022_v0, %v1021_v63 }
 0x366   : > { %v1031_v4 = vpack.c.bf16 %v1020_v2, %v1019_v1  ;;  %v1914_v5 = vpop.f32.mrb[28].mxu0 }
 0x367   : > { %v1005_v6 = vadd.f32 %v1914_v5, %v1569_v26  ;;  %v996_v7 = vpop.f32.mrb[29].mxu0 }
 0x368   : > { %v997_v8 = vadd.f32 %v1569_v26, %v996_v7  ;;  %v1915_v9 = vpop.f32.mrb[30].mxu0  ;;  %1940 = vmatprep.mubr.bf16.mxu1 %v1031_v4 }
 0x369   : > { %v1008_v10 = vadd.f32 %v1915_v9, %v1569_v26  ;;  %v999_v11 = vpop.f32.mrb[31].mxu0  ;;  %1941 = vmatmul.mubr.bf16.gmra.mrb[24].mxu1 %v1032_v3  ;;  %v1025_v13 = vmax.f32 %v1005_v6, 0.0 }
 0x36a   : > { %v1000_v12 = vadd.f32 %v1569_v26, %v999_v11  ;;  %v1023_v15 = vmax.f32 %v997_v8, 0.0 }
 0x36b   : > { %v1026_v14 = vmax.f32 %v1008_v10, 0.0 }
 0x36c   : > { %v1024_v16 = vmax.f32 %v1000_v12, 0.0 }
 0x36d   : > { %v1034_v17 = vpack.c.bf16 %v1026_v14, %v1025_v13 }
 0x36e   : > { %v1033_v18 = vpack.c.bf16 %v1024_v16, %v1023_v15 }
 0x370   : > { %1944 = vmatprep.mubr.bf16.mxu1 %v1033_v18 }
 0x371   : > { %1945 = vmatmul.mubr.bf16.gmra.mrb[28].mxu1 %v1034_v17 }
 0x372   : > { %2233 = shalt.err (!%p2230_p13)
}
 0x373   : > { %s2234_s26 = scalar_lea.hbm %s2684_s11, 1024  ;;  %s2238_s10 = scalar_lea.hbm %s2792_s9, 2048 }
 0x374   : > { %p2235_p9 = scmp.ne.s32.totalorder %s2684_s11, %s2234_s26  ;;  %p2239_p4 = scmp.lt.u32.totalorder %s2684_s11, %s2792_s9 }
 0x375   : > { %p2240_p8 = scmp.lt.u32.totalorder %s2238_s10, %s2234_s26  ;;  %p2242_p3 = scmp.lt.u32.totalorder %s2234_s26, %s2684_s11 }
 0x376   : > { %p2236_p0 = pnand %p2235_p9, %p2567_p10 }
 0x377   : > { %p2241_p6 = por %p2240_p8, %p2239_p4 }
 0x378   : > { %p2237_p11 = pneg %p2236_p0 }
 0x379   : > { %p2243_p5 = por %p2242_p3, %p2241_p6 }
 0x37b   : > { %p2244_p7 = pnand %p2243_p5, %p2237_p11 }
 0x37d   : > { %2247 = shalt.err (!%p2244_p7)
}
 0x37e   : > { %s2338_s19 = smov 64   ;;  %s2339_s27 = smov 4  }
 0x37f   : > { %1966 = dma.vmem_to_hbm [thread:$0]  (%p2567_p10), %s2676_s24, 1024, %s2684_s11, %s1356_s18, %s2338_s19, %s2338_s19, %s2339_s27  }
 0x380   : > { %s2818_s26 = sld [smem:[#allocation21_spill]]  ;;  %s2718_s29 = scalar_lea.vmem [#allocation12], %s1549_s28 }
 0x381   : > { %s1390_s28 = sshll.u32 %s2718_s29, 4  ;;  %s2819_s18 = sld [smem:[#allocation22_spill]]  ;;  %s2727_s28 = int_to_ptr.vmem [resolvable:$true] %s1390_s28 }
 0x382   : > { %s1361_s30 = scalar_lea.sflag [#allocation13], %s2619_s25  ;;  %s2248_s21 = scalar_lea.vmem %s2727_s28, 1024 }
 0x383   : > { %p2249_p12 = scmp.ne.s32.totalorder %s2727_s28, %s2248_s21  ;;  %s2340_s23 = smov [#allocation12]  }
 0x384   : > { %s2252_s13 = sshll.u32 %s2340_s23, 4  ;;  %s2253_s13 = int_to_ptr.vmem [resolvable:$false] %s2252_s13 }
 0x385   : > { %p2250_p1 = pnand %p2249_p12, %p2567_p10  ;;  %p2255_p13 = scmp.lt.s32.totalorder %s2727_s28, %s2253_s13 }
 0x386   : > { %v1578_v20 = vld [vmem:[%s2818_s26] ss:$0 sm:$0xff]  ;;  %s2254_s26 = scalar_lea.vmem %s2253_s13, 2048 }
 0x387   : > { %s2734_s10 = scalar_lea.hbm %s2819_s18, %s1660_s8  ;;  %p2251_p2 = pneg %p2250_p1 }
 0x388   : > { %p2256_p9 = scmp.lt.s32.totalorder %s2254_s26, %s2248_s21 }
 0x38a   : > { %p2257_p0 = por %p2256_p9, %p2255_p13 }
 0x38c   : > { %p2258_p11 = pnand %p2257_p0, %p2251_p2 }
 0x42c   : > { %v1934_v19 = vpop.f32.mrb[16].mxu1 }
 0x42d   : > { %v1140_v21 = vpop.f32.mrb[17].mxu1  ;;  %v1149_v23 = vadd.f32 %v1934_v19, %v1578_v20 }
 0x42e   : > { %v1935_v22 = vpop.f32.mrb[18].mxu1  ;;  %v1141_v26 = vadd.f32 %v1578_v20, %v1140_v21 }
 0x42f   : > { %v1152_v24 = vadd.f32 %v1935_v22, %v1578_v20  ;;  %v1143_v25 = vpop.f32.mrb[19].mxu1 }
 0x430   : > { %v1144_v27 = vadd.f32 %v1578_v20, %v1143_v25 }
 0x431   : > { %v1710_v28 = vpack.c.bf16 %v1152_v24, %v1149_v23 }
 0x432   : > { %v1705_v29 = vpack.c.bf16 %v1144_v27, %v1141_v26 }
 0x433   : > { %1749 = vst [vmem:[%s2718_s29 + $0x8] sm:$0xff] %v1710_v28  }
 0x434   : > { %1706 = vst [vmem:[%s2718_s29] sm:$0xff] %v1705_v29   ;;  %v1938_v30 = vpop.f32.mrb[20].mxu1 }
 0x435   : > { %v1156_v31 = vpop.f32.mrb[21].mxu1  ;;  %v1165_v33 = vadd.f32 %v1938_v30, %v1578_v20 }
 0x436   : > { %v1939_v32 = vpop.f32.mrb[22].mxu1  ;;  %v1157_v36 = vadd.f32 %v1578_v20, %v1156_v31 }
 0x437   : > { %v1168_v34 = vadd.f32 %v1939_v32, %v1578_v20  ;;  %v1159_v35 = vpop.f32.mrb[23].mxu1 }
 0x438   : > { %v1160_v37 = vadd.f32 %v1578_v20, %v1159_v35 }
 0x439   : > { %v1720_v38 = vpack.c.bf16 %v1168_v34, %v1165_v33 }
 0x43a   : > { %v1715_v39 = vpack.c.bf16 %v1160_v37, %v1157_v36 }
 0x43b   : > { %1751 = vst [vmem:[%s2718_s29 + $0x18] sm:$0xff] %v1720_v38  }
 0x43c   : > { %1750 = vst [vmem:[%s2718_s29 + $0x10] sm:$0xff] %v1715_v39   ;;  %v1942_v40 = vpop.f32.mrb[24].mxu1 }
 0x43d   : > { %v1172_v41 = vpop.f32.mrb[25].mxu1  ;;  %v1181_v43 = vadd.f32 %v1942_v40, %v1578_v20 }
 0x43e   : > { %v1943_v42 = vpop.f32.mrb[26].mxu1  ;;  %v1173_v46 = vadd.f32 %v1578_v20, %v1172_v41 }
 0x43f   : > { %v1184_v44 = vadd.f32 %v1943_v42, %v1578_v20  ;;  %v1175_v45 = vpop.f32.mrb[27].mxu1 }
 0x440   : > { %v1176_v47 = vadd.f32 %v1578_v20, %v1175_v45 }
 0x441   : > { %v1730_v48 = vpack.c.bf16 %v1184_v44, %v1181_v43 }
 0x442   : > { %v1725_v49 = vpack.c.bf16 %v1176_v47, %v1173_v46 }
 0x443   : > { %1753 = vst [vmem:[%s2718_s29 + $0x28] sm:$0xff] %v1730_v48  }
 0x444   : > { %1752 = vst [vmem:[%s2718_s29 + $0x20] sm:$0xff] %v1725_v49   ;;  %v1946_v50 = vpop.f32.mrb[28].mxu1 }
 0x445   : > { %v1188_v51 = vpop.f32.mrb[29].mxu1  ;;  %v1197_v53 = vadd.f32 %v1946_v50, %v1578_v20 }
 0x446   : > { %v1947_v52 = vpop.f32.mrb[30].mxu1  ;;  %v1189_v56 = vadd.f32 %v1578_v20, %v1188_v51 }
 0x447   : > { %v1200_v54 = vadd.f32 %v1947_v52, %v1578_v20  ;;  %v1191_v55 = vpop.f32.mrb[31].mxu1 }
 0x448   : > { %v1192_v57 = vadd.f32 %v1578_v20, %v1191_v55 }
 0x449   : > { %v1740_v58 = vpack.c.bf16 %v1200_v54, %v1197_v53 }
 0x44a   : > { %v1735_v59 = vpack.c.bf16 %v1192_v57, %v1189_v56 }
 0x44b   : > { %1755 = vst [vmem:[%s2718_s29 + $0x38] sm:$0xff] %v1740_v58  }
 0x44c   : > { %1754 = vst [vmem:[%s2718_s29 + $0x30] sm:$0xff] %v1735_v59  }
 0x44d   : > { %2261 = shalt.err (!%p2258_p11)
}
 0x44e   : > { %s2262_s17 = scalar_lea.hbm %s2734_s10, 1024  ;;  %s2266_s24 = scalar_lea.hbm %s2819_s18, 2048 }
 0x44f   : > { %p2263_p4 = scmp.ne.s32.totalorder %s2734_s10, %s2262_s17  ;;  %p2267_p3 = scmp.lt.u32.totalorder %s2734_s10, %s2819_s18 }
 0x450   : > { %p2268_p5 = scmp.lt.u32.totalorder %s2266_s24, %s2262_s17  ;;  %p2270_p12 = scmp.lt.u32.totalorder %s2262_s17, %s2734_s10 }
 0x451   : > { %p2264_p8 = pnand %p2263_p4, %p2567_p10 }
 0x452   : > { %p2269_p7 = por %p2268_p5, %p2267_p3 }
 0x453   : > { %p2265_p6 = pneg %p2264_p8 }
 0x454   : > { %p2271_p1 = por %p2270_p12, %p2269_p7 }
 0x456   : > { %p2272_p2 = pnand %p2271_p1, %p2265_p6 }
 0x458   : > { %2275 = shalt.err (!%p2272_p2)
}
 0x459   : > { %1967 = dma.vmem_to_hbm [thread:$0]  (%p2567_p10), %s2727_s28, 1024, %s2734_s10, %s1361_s30, %s2338_s19, %s2338_s19, %s2339_s27  }
 0x45a PF: > { %s2820_s21 = sld [smem:[#allocation19_spill]]  ;;  %s2821_s13 = sld [smem:[#allocation20_spill]] }
 0x45b   : > { %p2823_p9 = scmp.ge.s32.totalorder %s2326_s16, 2 }
 0x460   : > { %s1405_s26 = sand.u32 1, %s2820_s21   ;;  %p2822_p13 = scmp.ne.s32.totalorder %s2821_s13, 0 }
 0x461   : > { %s1406_s17 = scalar_lea.sflag [#allocation4], %s1405_s26 }
 0x462   : > { %p1988_p0 = pnand %p2823_p9, %p2822_p13 }
 0x464   : > { %2305 = dma.done.wait (!%p1988_p0), %s1406_s17, 1024  }
 0x465   : > { %2307 = vsyncadd (!%p1988_p0), %s1406_s17, 4294966272  ;;  %s1415_s20 = scalar_lea.sflag [#allocation13], %s1405_s26 }
 0x466   : > { %2309 = dma.done.wait (!%p1988_p0), %s1415_s20, 1024  }
 0x467   : > { %2311 = vsyncadd (!%p1988_p0), %s1415_s20, 4294966272  ;;  %p29_p10 = scmp.ge.s32.totalorder %s2557_s22, 4   ;;  %s2824_s13 = smov %s2318_s14 }
 0x468   : > { %s2825_s14 = smov %s2322_s15  ;;  %s2826_s15 = smov %s2573_s12 }
 0x469   : > { %s2827_s16 = smov %s2557_s22  ;;  %31 = sbr.rel (!%p29_p10) target bundleno = 12 (0xc), region = 134 }
 0x470   :  { %1420 = vsyncpa [#allocation3], 1 }
 0x471   :  { %1422 = vsyncpa [#allocation3 + $0x1], 1 }
 0x472   :  { %1423 = vsyncpa [#allocation6], 1 }
 0x473   :  { %1424 = vsyncpa [#allocation9], 1 }
 0x474   :  { %1425 = vsyncpa [#allocation4], 1 }
 0x475   :  { %1427 = vsyncpa [#allocation4 + $0x1], 1 }
 0x476   :  { %1428 = vsyncpa [#allocation13], 1 }
 0x477   :  { %1430 = vsyncpa [#allocation13 + $0x1], 1 }

</bundles_post_ra>
